<compile_context>
chip_gen: v6e
topology: v6e:2x2x1
jax: 0.10.0
libtpu: 0.0.40
codegen_flags: <defaults>
</compile_context>

<pallas_src>
import jax
import jax.numpy as jnp
from jax.experimental import pallas as pl
from jax.experimental.pallas import tpu as pltpu


def relation_head_kernel(x_ref, w1_ref, b1_ref, w2_ref, b2_ref, o_ref):
    # x: (TILE_N, 2C)  w1: (2C, C//2)  b1: (1, C//2)  w2: (1, C//2)
    # b2: SMEM (1,)    o: (1, 1, TILE_N)
    h = jnp.dot(x_ref[...], w1_ref[...], preferred_element_type=jnp.float32)
    h = jnp.maximum(h + b1_ref[...], 0.0)                      # (TILE_N, C//2)

    # fc2, lane-dense: contract w2's feature axis against h's feature axis
    # (A @ B.T pattern) -> result (1, TILE_N) comes straight off the MXU in a
    # lane-major layout, so the store is an unmasked full-lane vst.
    o = jax.lax.dot_general(
        w2_ref[...], h,
        dimension_numbers=(((1,), (1,)), ((), ())),
        preferred_element_type=jnp.float32)
    o = o + b2_ref[0]
    o_ref[...] = o[None].astype(o_ref.dtype)                   # (1, 1, TILE_N)


def _round_up(x, m):
    return ((x + m - 1) // m) * m


def relation_head_forward(x, w1, b1, w2, b2, *, tile_n=8192):
    """x: [N, 2*C]. Returns [N, 1] float32 == fc2(relu(fc1(x)))."""
    n, d_in = x.shape
    d_hid = w1.shape[1]

    # Row tile: multiple of 128 (lane-dense output block + sublane-aligned x
    # block), but never larger than the (padded) problem itself.
    tile_n = max(128, _round_up(min(tile_n, _round_up(n, 128)), 128))
    n_pad = _round_up(n, tile_n)
    g = n_pad // tile_n
    if n_pad != n:
        x = jnp.pad(x, ((0, n_pad - n), (0, 0)))

    out = pl.pallas_call(
        relation_head_kernel,
        out_shape=jax.ShapeDtypeStruct((g, 1, tile_n), jnp.float32),
        grid=(g,),
        in_specs=[
            pl.BlockSpec((tile_n, d_in), lambda i: (i, 0)),      # x row tile
            pl.BlockSpec((d_in, d_hid), lambda i: (0, 0)),       # w1: resident
            pl.BlockSpec((1, d_hid), lambda i: (0, 0)),          # b1: resident
            pl.BlockSpec((1, d_hid), lambda i: (0, 0)),          # w2: resident
            pl.BlockSpec(memory_space=pltpu.MemorySpace.SMEM),   # b2: scalar
        ],
        out_specs=pl.BlockSpec((1, 1, tile_n), lambda i: (i, 0, 0)),
        compiler_params=pltpu.CompilerParams(
            dimension_semantics=("parallel",),     # v7x: 2 TCs share the grid
            vmem_limit_bytes=32 * 1024 * 1024,     # fits v5e/v6e/v7x budgets
        ),
    )(x, w1, b1, w2, b2)

    # (G, 1, TILE_N) row-major == rows in order; reshape back to [N, 1].
    return out.reshape(n_pad, 1)[:n]


def init_relation_head_params(key, in_channels):
    """Matches PyTorch init: Linear weights ~ N(0, 0.01), biases = 0."""
    k1, k2 = jax.random.split(key)
    d_in = in_channels * 2
    d_hid = in_channels // 2
    # fc1.weight.T  -> [in, out]
    w1 = 0.01 * jax.random.normal(k1, (d_in, d_hid), dtype=jnp.float32)
    b1 = jnp.zeros((1, d_hid), dtype=jnp.float32)
    # fc2.weight (native PyTorch layout [1, d_hid])
    w2 = 0.01 * jax.random.normal(k2, (1, d_hid), dtype=jnp.float32)
    b2 = jnp.zeros((1,), dtype=jnp.float32)
    return w1, b1, w2, b2


if __name__ == "__main__":
    key = jax.random.PRNGKey(0)
    kx, kx2, kp = jax.random.split(key, 3)

    in_channels = 32            # fc1: 64 -> 16, fc2: 16 -> 1
    w1, b1, w2, b2 = init_relation_head_params(kp, in_channels)

    def reference(xv):
        return jnp.maximum(xv @ w1 + b1, 0.0) @ w2.T + b2[0]

    # Small case (single tile, padded 8 -> 128 rows).
    x_small = jax.random.normal(kx, (8, in_channels * 2), dtype=jnp.float32)
    out_small = jax.block_until_ready(
        relation_head_forward(x_small, w1, b1, w2, b2))
    assert out_small.shape == (8, 1)
    assert jnp.allclose(out_small, reference(x_small), atol=1e-5, rtol=1e-5)

    # Multi-tile case with a ragged remainder (exercises grid + padding path).
    x_big = jax.random.normal(kx2, (300, in_channels * 2), dtype=jnp.float32)
    out_big = jax.block_until_ready(
        relation_head_forward(x_big, w1, b1, w2, b2, tile_n=128))
    assert out_big.shape == (300, 1)
    assert jnp.allclose(out_big, reference(x_big), atol=1e-5, rtol=1e-5)

    print("KERNEL_OK")
</pallas_src>

<mosaic_0001>
module attributes {stable_mosaic.version = 11 : i64} {
  func.func @relation_head_kernel(%arg0: i32, %arg1: memref<128x64xf32, #tpu.memory_space<vmem>>, %arg2: memref<64x16xf32, #tpu.memory_space<vmem>>, %arg3: memref<1x16xf32, #tpu.memory_space<vmem>>, %arg4: memref<1x16xf32, #tpu.memory_space<vmem>>, %arg5: memref<1xf32, #tpu.memory_space<smem>>, %arg6: memref<1x1x128xf32, #tpu.memory_space<vmem>>) attributes {dimension_semantics = [#tpu.dimension_semantics<parallel>], iteration_bounds = array<i64: 1>, scalar_prefetch = 0 : i64, scratch_operands = 0 : i64, tpu.core_type = #tpu.core_type<tc>, window_params = [{transform_indices = @transform_0, window_bounds = array<i64: 128, 64>}, {pipeline_mode = #tpu.pipeline_mode<synchronous>, transform_indices = @transform_1, window_bounds = array<i64: 64, 16>}, {pipeline_mode = #tpu.pipeline_mode<synchronous>, transform_indices = @transform_2, window_bounds = array<i64: 1, 16>}, {pipeline_mode = #tpu.pipeline_mode<synchronous>, transform_indices = @transform_3, window_bounds = array<i64: 1, 16>}, {transform_indices = @transform_4, window_bounds = array<i64: 1>}, {transform_indices = @transform_5, window_bounds = array<i64: 1, 1, 128>}]} {
    %c0 = arith.constant 0 : index
    %c0_0 = arith.constant 0 : index
    %0 = vector.load %arg1[%c0, %c0_0] : memref<128x64xf32, #tpu.memory_space<vmem>>, vector<128x64xf32>
    %c0_1 = arith.constant 0 : index
    %c0_2 = arith.constant 0 : index
    %1 = vector.load %arg2[%c0_1, %c0_2] : memref<64x16xf32, #tpu.memory_space<vmem>>, vector<64x16xf32>
    %cst = arith.constant dense<0.000000e+00> : vector<128x16xf32>
    %2 = tpu.matmul %0, %1, %cst {dimension_numbers = #tpu.dot_dimension_numbers<[1], [0], [0], [1], [0, 0, 1, 1], [], []>} : vector<128x64xf32>, vector<64x16xf32>, vector<128x16xf32> -> vector<128x16xf32>
    %c0_3 = arith.constant 0 : index
    %c0_4 = arith.constant 0 : index
    %3 = vector.load %arg3[%c0_3, %c0_4] : memref<1x16xf32, #tpu.memory_space<vmem>>, vector<1x16xf32>
    %4 = vector.broadcast %3 : vector<1x16xf32> to vector<128x16xf32>
    %5 = arith.addf %2, %4 : vector<128x16xf32>
    %cst_5 = arith.constant 0.000000e+00 : f32
    %6 = vector.broadcast %cst_5 : f32 to vector<128x16xf32>
    %7 = arith.maximumf %5, %6 : vector<128x16xf32>
    %c0_6 = arith.constant 0 : index
    %c0_7 = arith.constant 0 : index
    %8 = vector.load %arg4[%c0_6, %c0_7] : memref<1x16xf32, #tpu.memory_space<vmem>>, vector<1x16xf32>
    %cst_8 = arith.constant dense<0.000000e+00> : vector<1x128xf32>
    %9 = tpu.matmul %8, %7, %cst_8 {dimension_numbers = #tpu.dot_dimension_numbers<[1], [1], [0], [0], [0, 0, 1, 0], [], []>} : vector<1x16xf32>, vector<128x16xf32>, vector<1x128xf32> -> vector<1x128xf32>
    %c0_9 = arith.constant 0 : index
    %10 = memref.load %arg5[%c0_9] : memref<1xf32, #tpu.memory_space<smem>>
    %11 = vector.broadcast %10 : f32 to vector<1x128xf32>
    %12 = arith.addf %9, %11 : vector<1x128xf32>
    %13 = vector.shape_cast %12 : vector<1x128xf32> to vector<1x1x128xf32>
    %c0_10 = arith.constant 0 : index
    %c0_11 = arith.constant 0 : index
    %c0_12 = arith.constant 0 : index
    %14 = vector.load %arg6[%c0_10, %c0_11, %c0_12] : memref<1x1x128xf32, #tpu.memory_space<vmem>>, vector<1x1x128xf32>
    tpu.vector_store %arg6[%c0_10, %c0_11, %c0_12], %13 {strides = array<i32>} : memref<1x1x128xf32, #tpu.memory_space<vmem>>, vector<1x1x128xf32>,
    return
  }
  func.func @transform_0(%arg0: i32) -> (i32, i32) {
    %c0_i32 = arith.constant 0 : i32
    %c0_i32_0 = arith.constant 0 : i32
    return %arg0, %c0_i32 : i32, i32
  }
  func.func @transform_1(%arg0: i32) -> (i32, i32) {
    %c0_i32 = arith.constant 0 : i32
    %c0_i32_0 = arith.constant 0 : i32
    %c0_i32_1 = arith.constant 0 : i32
    return %c0_i32, %c0_i32_0 : i32, i32
  }
  func.func @transform_2(%arg0: i32) -> (i32, i32) {
    %c0_i32 = arith.constant 0 : i32
    %c0_i32_0 = arith.constant 0 : i32
    %c0_i32_1 = arith.constant 0 : i32
    return %c0_i32, %c0_i32_0 : i32, i32
  }
  func.func @transform_3(%arg0: i32) -> (i32, i32) {
    %c0_i32 = arith.constant 0 : i32
    %c0_i32_0 = arith.constant 0 : i32
    %c0_i32_1 = arith.constant 0 : i32
    return %c0_i32, %c0_i32_0 : i32, i32
  }
  func.func @transform_4(%arg0: i32) -> i32 {
    %c0_i32 = arith.constant 0 : i32
    %c0_i32_0 = arith.constant 0 : i32
    return %c0_i32 : i32
  }
  func.func @transform_5(%arg0: i32) -> (i32, i32, i32) {
    %c0_i32 = arith.constant 0 : i32
    %c0_i32_0 = arith.constant 0 : i32
    %c0_i32_1 = arith.constant 0 : i32
    return %arg0, %c0_i32, %c0_i32_0 : i32, i32, i32
  }
}

</mosaic_0001>

<bundles_post_ra>
// kernel: tpu_custom_call.1
= control target key start
LH: loop header
LB: loop body
LE: loop exit
PB: predicated region body
PF: predicated region fallthrough
CT: control target
= control target key end

     0   :  { %vm53_vm0 = vcmask 523264   ;;  %s754_s0 = inlined_call_operand.vmem [shape: f32[128,64], index: 0, kind: input, shape index: {}]   ;;  %s755_s1 = inlined_call_operand.vmem [shape: f32[64,16], index: 1, kind: input, shape index: {}]   ;;  %s756_s2 = inlined_call_operand.vmem [shape: f32[1,16], index: 2, kind: input, shape index: {}]   ;;  %s757_s3 = inlined_call_operand.vmem [shape: f32[1,16], index: 3, kind: input, shape index: {}]   ;;  %s758_s4 = inlined_call_operand.<no memory space> [shape: f32[1], index: 4, kind: input, shape index: {}]   ;;  %s759_s5 = inlined_call_operand.hbm [shape: f32[1,1,128], index: 5, kind: output, shape index: {}]  }
   0x1   :  { %v45_v0 = vld [vmem:[%s755_s1 + $0x38] sm:$0xff]  ;;  %v44_v1 = vld [vmem:[%s755_s1 + $0x30] sm:$0xff]  ;;  %v43_v2 = vld [vmem:[%s755_s1 + $0x28] sm:$0xff] }
   0x2   :  { %478 = vmatprep.subr.mxu0 %v45_v0  ;;  %v22_v3 = vld [vmem:[%s754_s0] sm:$0xff]  ;;  %v41_v5 = vld [vmem:[%s755_s1 + $0x18] sm:$0xff]  ;;  %v40_v6 = vld [vmem:[%s755_s1 + $0x10] sm:$0xff] }
   0x3   :  { %479 = vmatpush3.msra.mxu0 %v45_v0  ;;  %494 = vmatprep.mubr.msk.f32.mxu0 %vm53_vm0, %v22_v3  ;;  %v42_v4 = vld [vmem:[%s755_s1 + $0x20] sm:$0xff] }
   0x4   :  { %480 = vmatprep.subr.mxu0 %v44_v1 }
   0x5   :  { %481 = vmatpush3.msra.mxu0 %v44_v1 }
   0x6   :  { %482 = vmatprep.subr.mxu0 %v43_v2 }
   0x7   :  { %483 = vmatpush3.msra.mxu0 %v43_v2 }
   0x8   :  { %484 = vmatprep.subr.mxu0 %v42_v4 }
   0x9   :  { %485 = vmatpush3.msra.mxu0 %v42_v4 }
   0xa   :  { %11 = vsyncpa [#allocation4], 0  ;;  %486 = vmatprep.subr.mxu0 %v41_v5  ;;  %v39_v7 = vld [vmem:[%s755_s1 + $0x8] sm:$0xff]  ;;  %v38_v8 = vld [vmem:[%s755_s1] sm:$0xff]  ;;  %v578_v24 = vmov 0.0   ;;  %vm579_vm1 = vmmov 0  }
   0xb   :  { %487 = vmatpush3.msra.mxu0 %v41_v5  ;;  %v23_v9 = vld [vmem:[%s754_s0 + $0x8] sm:$0xff]  ;;  %v24_v10 = vld [vmem:[%s754_s0 + $0x10] sm:$0xff]  ;;  %v25_v11 = vld [vmem:[%s754_s0 + $0x18] sm:$0xff]  ;;  %518 = vmatprep.subr.mxu1 %v578_v24  ;;  %vm266_vm2 = vcmask 130048   ;;  %s580_s18 = smov [#allocation3]  }
   0xc   :  { %488 = vmatprep.subr.mxu0 %v40_v6  ;;  %v26_v12 = vld [vmem:[%s754_s0 + $0x20] sm:$0xff]  ;;  %v27_v13 = vld [vmem:[%s754_s0 + $0x28] sm:$0xff]  ;;  %v28_v14 = vld [vmem:[%s754_s0 + $0x30] sm:$0xff]  ;;  %550 = vmatprep.mubr.msk.f32.mxu1 %vm579_vm1, %v578_v24  ;;  %s395_s19 = sshll.u32 %s580_s18, 4  ;;  %s396_s19 = int_to_ptr.vmem [resolvable:$true] %s395_s19 }
   0xd   :  { %489 = vmatpush3.msra.mxu0 %v40_v6  ;;  %v29_v15 = vld [vmem:[%s754_s0 + $0x38] sm:$0xff]  ;;  %v30_v16 = vld [vmem:[%s754_s0 + $0x40] sm:$0xff]  ;;  %v31_v17 = vld [vmem:[%s754_s0 + $0x48] sm:$0xff]  ;;  %s556_s20 = scalar_lea.vmem %s396_s19, 16  ;;  %s560_s21 = scalar_lea.vmem %s396_s19, 32 }
   0xe   :  { %490 = vmatprep.subr.mxu0 %v39_v7  ;;  %v32_v18 = vld [vmem:[%s754_s0 + $0x50] sm:$0xff]  ;;  %v33_v19 = vld [vmem:[%s754_s0 + $0x58] sm:$0xff]  ;;  %v34_v20 = vld [vmem:[%s754_s0 + $0x60] sm:$0xff]  ;;  %p557_p0 = scmp.ne.s32.totalorder %s396_s19, %s556_s20  ;;  %p561_p1 = scmp.lt.s32.totalorder %s396_s19, %s396_s19 }
   0xf   :  { %491 = vmatpush3.msra.mxu0 %v39_v7  ;;  %v35_v21 = vld [vmem:[%s754_s0 + $0x68] sm:$0xff]  ;;  %v36_v22 = vld [vmem:[%s754_s0 + $0x70] sm:$0xff]  ;;  %v37_v23 = vld [vmem:[%s754_s0 + $0x78] sm:$0xff]  ;;  %p562_p2 = scmp.lt.s32.totalorder %s560_s21, %s556_s20 }
  0x10   :  { %492 = vmatprep.subr.mxu0 %v38_v8  ;;  %v403_v39 = vld [vmem:[%s756_s2] ss:$0 sm:$0xff] }
  0x11   :  { %493 = vmatpush3.msra.mxu0 %v38_v8  ;;  %p563_p3 = por %p562_p2, %p561_p1 }
  0x12   :  { %495 = vmatmul.mubr.msk.f32.vlgmr.msra.gmra.mxu0 %vm53_vm0, %v23_v9 }
  0x13   :  { %497 = vmatprep.mubr.msk.f32.mxu0 %vm53_vm0, %v24_v10  ;;  %v263_v10 = vld [vmem:[%s757_s3] sm:$0x1]  ;;  %p564_p4 = pnand %p563_p3, %p557_p0 }
  0x16   :  { %498 = vmatmul.mubr.msk.f32.gmra.mxu0 %vm53_vm0, %v25_v11  ;;  %v265_v11 = vstv %s758_s4 }
  0x17   :  { %500 = vmatprep.mubr.msk.f32.mxu0 %vm53_vm0, %v26_v12 }
  0x1a   :  { %501 = vmatmul.mubr.msk.f32.gmra.mxu0 %vm53_vm0, %v27_v13 }
  0x1b   :  { %503 = vmatprep.mubr.msk.f32.mxu0 %vm53_vm0, %v28_v14 }
  0x1e   :  { %504 = vmatmul.mubr.msk.f32.gmra.mxu0 %vm53_vm0, %v29_v15 }
  0x1f   :  { %506 = vmatprep.mubr.msk.f32.mxu0 %vm53_vm0, %v30_v16 }
  0x22   :  { %507 = vmatmul.mubr.msk.f32.gmra.mxu0 %vm53_vm0, %v31_v17 }
  0x23   :  { %509 = vmatprep.mubr.msk.f32.mxu0 %vm53_vm0, %v32_v18 }
  0x26   :  { %510 = vmatmul.mubr.msk.f32.gmra.mxu0 %vm53_vm0, %v33_v19 }
  0x27   :  { %512 = vmatprep.mubr.msk.f32.mxu0 %vm53_vm0, %v34_v20 }
  0x2a   :  { %513 = vmatmul.mubr.msk.f32.gmra.mxu0 %vm53_vm0, %v35_v21 }
  0x2b   :  { %515 = vmatprep.mubr.msk.f32.mxu0 %vm53_vm0, %v36_v22 }
  0x2e   :  { %516 = vmatmul.mubr.msk.f32.gmra.mxu0 %vm53_vm0, %v37_v23 }
  0xd2   :  { %v701_v25 = vpop.f32.mrf.mxu0 }
  0xd3   :  { %v174_v5 = vadd.f32 %v701_v25, %v403_v39 }
  0xd4   :  { %v703_v26 = vpop.f32.mrf.mxu0 }
  0xd5   :  { %v248_v7 = vmax.f32 %v174_v5, 0.0  ;;  %v169_v8 = vadd.f32 %v403_v39, %v703_v26 }
  0xd6   :  { %v499_v27 = vpop.f32.mrf.mxu0 }
  0xd7   :  { %v184_v1 = vadd.f32 %v499_v27, %v403_v39  ;;  %v247_v9 = vmax.f32 %v169_v8, 0.0 }
  0xd8   :  { %v705_v28 = vpop.f32.mrf.mxu0 }
  0xd9   :  { %v250_v3 = vmax.f32 %v184_v1, 0.0  ;;  %v179_v4 = vadd.f32 %v403_v39, %v705_v28 }
  0xda   :  { %v502_v29 = vpop.f32.mrf.mxu0 }
  0xdb   :  { %v194_v61 = vadd.f32 %v502_v29, %v403_v39  ;;  %v249_v6 = vmax.f32 %v179_v4, 0.0 }
  0xdc   :  { %v188_v30 = vpop.f32.mrf.mxu0 }
  0xdd   :  { %v252_v63 = vmax.f32 %v194_v61, 0.0  ;;  %v189_v0 = vadd.f32 %v403_v39, %v188_v30 }
  0xde   :  { %v505_v31 = vpop.f32.mrf.mxu0 }
  0xdf   :  { %v204_v57 = vadd.f32 %v505_v31, %v403_v39  ;;  %v251_v2 = vmax.f32 %v189_v0, 0.0 }
  0xe0   :  { %v198_v32 = vpop.f32.mrf.mxu0 }
  0xe1   :  { %v254_v59 = vmax.f32 %v204_v57, 0.0  ;;  %v199_v60 = vadd.f32 %v403_v39, %v198_v32 }
  0xe2   :  { %v508_v33 = vpop.f32.mrf.mxu0 }
  0xe3   :  { %v214_v53 = vadd.f32 %v508_v33, %v403_v39  ;;  %v253_v62 = vmax.f32 %v199_v60, 0.0 }
  0xe4   :  { %v208_v34 = vpop.f32.mrf.mxu0 }
  0xe5   :  { %v256_v55 = vmax.f32 %v214_v53, 0.0  ;;  %v209_v56 = vadd.f32 %v403_v39, %v208_v34 }
  0xe6   :  { %v511_v35 = vpop.f32.mrf.mxu0 }
  0xe7   :  { %v224_v49 = vadd.f32 %v511_v35, %v403_v39  ;;  %v255_v58 = vmax.f32 %v209_v56, 0.0 }
  0xe8   :  { %v218_v36 = vpop.f32.mrf.mxu0 }
  0xe9   :  { %v258_v51 = vmax.f32 %v224_v49, 0.0  ;;  %v219_v52 = vadd.f32 %v403_v39, %v218_v36 }
  0xea   :  { %v514_v37 = vpop.f32.mrf.mxu0 }
  0xeb   :  { %v234_v45 = vadd.f32 %v514_v37, %v403_v39  ;;  %v257_v54 = vmax.f32 %v219_v52, 0.0 }
  0xec   :  { %v228_v38 = vpop.f32.mrf.mxu0 }
  0xed   :  { %v260_v47 = vmax.f32 %v234_v45, 0.0  ;;  %v229_v48 = vadd.f32 %v403_v39, %v228_v38 }
  0xee   :  { %v517_v40 = vpop.f32.mrf.mxu0 }
  0xef   :  { %v244_v41 = vadd.f32 %v517_v40, %v403_v39  ;;  %v259_v50 = vmax.f32 %v229_v48, 0.0 }
  0xf0   :  { %v238_v42 = vpop.f32.mrf.mxu0 }
  0xf1   :  { %v262_v43 = vmax.f32 %v244_v41, 0.0  ;;  %v239_v44 = vadd.f32 %v403_v39, %v238_v42 }
  0xf3   :  { %519 = vmatpush3.xpose.msk.msra.mxu1 %vm266_vm2, %v262_v43  ;;  %v261_v46 = vmax.f32 %v239_v44, 0.0 }
  0xf4   :  { %520 = vmatprep.subr.mxu1 %v578_v24 }
  0xf7   :  { %521 = vmatpush3.xpose.msk.msra.mxu1 %vm266_vm2, %v261_v46 }
  0xf8   :  { %522 = vmatprep.subr.mxu1 %v578_v24 }
  0xfb   :  { %523 = vmatpush3.xpose.msk.msra.mxu1 %vm266_vm2, %v260_v47 }
  0xfc   :  { %524 = vmatprep.subr.mxu1 %v578_v24 }
  0xff   :  { %525 = vmatpush3.xpose.msk.msra.mxu1 %vm266_vm2, %v259_v50 }
 0x100   :  { %526 = vmatprep.subr.mxu1 %v578_v24 }
 0x103   :  { %527 = vmatpush3.xpose.msk.msra.mxu1 %vm266_vm2, %v258_v51 }
 0x104   :  { %528 = vmatprep.subr.mxu1 %v578_v24 }
 0x107   :  { %529 = vmatpush3.xpose.msk.msra.mxu1 %vm266_vm2, %v257_v54 }
 0x108   :  { %530 = vmatprep.subr.mxu1 %v578_v24 }
 0x10b   :  { %531 = vmatpush3.xpose.msk.msra.mxu1 %vm266_vm2, %v256_v55 }
 0x10c   :  { %532 = vmatprep.subr.mxu1 %v578_v24 }
 0x10f   :  { %533 = vmatpush3.xpose.msk.msra.mxu1 %vm266_vm2, %v255_v58 }
 0x110   :  { %534 = vmatprep.subr.mxu1 %v578_v24 }
 0x113   :  { %535 = vmatpush3.xpose.msk.msra.mxu1 %vm266_vm2, %v254_v59 }
 0x114   :  { %536 = vmatprep.subr.mxu1 %v578_v24 }
 0x117   :  { %537 = vmatpush3.xpose.msk.msra.mxu1 %vm266_vm2, %v253_v62 }
 0x118   :  { %538 = vmatprep.subr.mxu1 %v578_v24 }
 0x11b   :  { %539 = vmatpush3.xpose.msk.msra.mxu1 %vm266_vm2, %v252_v63 }
 0x11c   :  { %540 = vmatprep.subr.mxu1 %v578_v24 }
 0x11f   :  { %541 = vmatpush3.xpose.msk.msra.mxu1 %vm266_vm2, %v251_v2 }
 0x120   :  { %542 = vmatprep.subr.mxu1 %v578_v24 }
 0x123   :  { %543 = vmatpush3.xpose.msk.msra.mxu1 %vm266_vm2, %v250_v3 }
 0x124   :  { %544 = vmatprep.subr.mxu1 %v578_v24 }
 0x127   :  { %545 = vmatpush3.xpose.msk.msra.mxu1 %vm266_vm2, %v249_v6 }
 0x128   :  { %546 = vmatprep.subr.mxu1 %v578_v24 }
 0x12b   :  { %547 = vmatpush3.xpose.msk.msra.mxu1 %vm266_vm2, %v248_v7 }
 0x12c   :  { %548 = vmatprep.subr.mxu1 %v578_v24 }
 0x12f   :  { %549 = vmatpush3.xpose.msk.msra.mxu1 %vm266_vm2, %v247_v9 }
 0x132   :  { %551 = vmatmul.mubr.msk.f32.vlgmr.msra.gmra.mxu1 %vm266_vm2, %v263_v10 }
 0x1f2   :  { %v384_v12 = vpop.f32.mrf.mxu1 }
 0x1f3   :  { %v385_v13 = vadd.f32 %v384_v12, %v265_v11 }
 0x1f4   :  { %v552_v14 = vpop.f32.mrf.mxu1 }
 0x1f5   :  { %388 = vst [vmem:[#allocation3] sm:$0x1] %v385_v13 }
 0x1f6   :  { %567 = shalt.err (!%p564_p4)
}
 0x1f7   :  { %398 = dma.vmem_to_hbm [thread:$0]  %s396_s19, 16, %s759_s5, [#allocation4]  }
 0x1f8   :  { %576 = dma.done.wait [#allocation4], 16  }
 0x1f9   :  { %577 = vsyncadd [#allocation4], 4294967280 }
 0x1fa   :  { %402 = vsyncpa [#allocation4], 1 }

</bundles_post_ra>
